<compile_context>
chip_gen: v5e
topology: v5e:2x2
jax: 0.10.0
libtpu: 0.0.40
codegen_flags: <defaults>
</compile_context>

<pallas_src>
import functools

import jax
import jax.numpy as jnp
from jax.experimental import pallas as pl
from jax.experimental.pallas import tpu as pltpu

_LANES = 128
_SUBS = 16                           # sublanes per chunk: 1 bf16 tile / 2 f32 tiles
_CHUNK = _SUBS * _LANES              # 2048 elements per chunk
_GROUP = 32                          # chunks per inner-loop iteration (256 KiB f32)
_MAX_BLOCK_BYTES = 8 * 1024 * 1024   # per-grid-step input block (double buffered)
_I32_MAX = 2147483647


def _cdiv(a, b):
    return -(-a // b)


def _ceil_to(x, m):
    return _cdiv(x, m) * m


def _argmax_kernel(beta_ref, out_ref, vmax_sc, vchunk_sc, *, group):
    """Running first-occurrence argmax over (CB, 16, 128) blocks of beta.

    beta_ref  : (CB, 16, 128) f32/bf16 VMEM block (row-major slice of beta)
    out_ref   : (1, 1) i32 — flat argmax index, written on the last grid step
    vmax_sc   : (16, 128) f32 scratch — per (sublane, lane) running max
    vchunk_sc : (16, 128) i32 scratch — global chunk index of the first max
    """
    i = pl.program_id(0)
    cb = beta_ref.shape[0]

    @pl.when(i == 0)
    def _init():
        vmax_sc[...] = jnp.full(vmax_sc.shape, -jnp.inf, vmax_sc.dtype)
        vchunk_sc[...] = jnp.zeros(vchunk_sc.shape, vchunk_sc.dtype)

    @pl.loop(0, cb // group)
    def _body(g):
        off = pl.multiple_of(g * group, group)
        v = beta_ref[pl.ds(off, group)].astype(jnp.float32)     # (group, 16, 128)
        gmax = jnp.max(v, axis=0)                               # (16, 128)
        ci = jax.lax.broadcasted_iota(jnp.int32, v.shape, 0)
        first = jnp.min(jnp.where(v == gmax[None, :, :], ci, _I32_MAX), axis=0)
        gchunk = first + (i * cb + off)                         # global chunk idx
        # Strict '>' keeps the earlier occurrence on cross-group / cross-block
        # ties (first-max semantics, matching torch.argmax / jnp.argmax).
        better = gmax > vmax_sc[...]
        vchunk_sc[...] = jnp.where(better, gchunk, vchunk_sc[...])
        vmax_sc[...] = jnp.maximum(vmax_sc[...], gmax)

    @pl.when(i == pl.num_programs(0) - 1)
    def _finalize():
        vmax = vmax_sc[...]
        sub = jax.lax.broadcasted_iota(jnp.int32, vmax.shape, 0)
        lane = jax.lax.broadcasted_iota(jnp.int32, vmax.shape, 1)
        flat = (vchunk_sc[...] * _SUBS + sub) * _LANES + lane
        m = jnp.max(jnp.max(vmax, axis=1, keepdims=True), axis=0, keepdims=True)
        cand = jnp.where(vmax == m, flat, _I32_MAX)
        out_ref[...] = jnp.min(jnp.min(cand, axis=1, keepdims=True),
                               axis=0, keepdims=True)


@functools.lru_cache(maxsize=None)
def _build_argmax_call(cb, grid, group, vmem_limit):
    kernel = functools.partial(_argmax_kernel, group=group)
    return pl.pallas_call(
        kernel,
        out_shape=jax.ShapeDtypeStruct((1, 1), jnp.int32),
        grid=(grid,),
        in_specs=[pl.BlockSpec((cb, _SUBS, _LANES), lambda i: (i, 0, 0))],
        out_specs=pl.BlockSpec((1, 1), lambda i: (0, 0)),
        scratch_shapes=[pltpu.VMEM((_SUBS, _LANES), jnp.float32),
                        pltpu.VMEM((_SUBS, _LANES), jnp.int32)],
        compiler_params=pltpu.CompilerParams(
            dimension_semantics=("arbitrary",),
            vmem_limit_bytes=vmem_limit,
            # Let XLA fuse the wrapper's pad/reshape into the pallas input
            # instead of a separate HBM round trip.
            allow_input_fusion=[True]),
    )


def pallas_argmax(beta, *, max_block_bytes=_MAX_BLOCK_BYTES):
    """First-occurrence argmax of beta (flattened) -> int32 device scalar."""
    beta = jnp.asarray(beta)
    if beta.dtype != jnp.bfloat16:          # read bf16 natively; else promote
        beta = beta.astype(jnp.float32)
    beta = beta.reshape(-1)
    k = beta.shape[0]
    itemsize = jnp.dtype(beta.dtype).itemsize

    chunks = max(1, _cdiv(k, _CHUNK))
    max_cb = max(1, max_block_bytes // (_CHUNK * itemsize))
    max_cb = 1 << (max_cb.bit_length() - 1)          # round down to power of 2

    if chunks <= max_cb:
        grid = 1
        cb = pl.next_power_of_2(chunks)              # bucket -> fewer compiles
        group = min(_GROUP, cb)
    else:
        group = min(_GROUP, max_cb)
        grid = _cdiv(chunks, max_cb)
        cb = _ceil_to(_cdiv(chunks, grid), group)    # pad capped at ~group chunks

    padded = grid * cb * _CHUNK
    assert padded < 2 ** 31, "flat argmax index must fit in int32"

    # Pad with -inf so padding never wins the argmax; pack sublane+lane dense.
    slab = jnp.pad(beta, (0, padded - k), constant_values=-jnp.inf)
    slab = slab.reshape(grid * cb, _SUBS, _LANES)

    block_bytes = cb * _CHUNK * itemsize
    vmem_limit = int(min(48 << 20, 2 * block_bytes + (8 << 20)))
    out = _build_argmax_call(cb, grid, group, vmem_limit)(slab)   # (1, 1) i32
    return out[0, 0]


_argmax_jit = jax.jit(pallas_argmax)


@functools.partial(jax.jit, static_argnames=("batch_size",))
def _exploit_impl(beta, *, batch_size):
    idx = pallas_argmax(beta)
    # Batch broadcast is a cheap lane-dense XLA fill fused into the same
    # executable; the kernel itself stays batch-size independent.
    return jnp.full((batch_size,), idx, dtype=jnp.int32)


class RegAgent:
    """JAX/Pallas port of the PyTorch RegAgent."""

    def __init__(self, MDP=None, name="reg_agent"):
        self.MDP = MDP
        self.name = name
        self.use_precision = getattr(MDP, "use_precision", False)

    def train_agent(self, *args):
        pass

    def forward(self, beta, sigma, contexts=None):
        # The reference PyTorch forward body is `pass` (returns None).
        return None

    def __call__(self, beta, sigma, contexts=None):
        return self.forward(beta, sigma, contexts)

    def exploit(self, beta, contexts):
        """Pick separate best arm for each context: argmax(beta) broadcast."""
        batch_size = int(contexts.shape[0])
        return _exploit_impl(beta, batch_size=batch_size)

    def get_best_arm(self, beta, *args):
        """Pick one best arm to deploy across all contexts (python int)."""
        # int() is a deliberate host sync, mirroring torch .item().
        return int(_argmax_jit(beta))


if __name__ == "__main__":
    key = jax.random.PRNGKey(0)
    k_beta, k_ctx, k_big, k_mb = jax.random.split(key, 4)

    num_arms = 8
    batch_size = 4
    context_len = 16

    beta = jax.random.normal(k_beta, (num_arms,), dtype=jnp.float32)
    contexts = jax.random.normal(k_ctx, (batch_size, context_len),
                                 dtype=jnp.float32)
    sigma = jnp.eye(num_arms, dtype=jnp.float32)

    agent = RegAgent(MDP=None, name="reg_agent")

    # forward is a no-op by spec.
    _ = agent(beta, sigma, contexts)

    arms = jax.block_until_ready(agent.exploit(beta, contexts))
    best = agent.get_best_arm(beta)

    ref_idx = int(jnp.argmax(beta))
    assert arms.shape == (batch_size,)
    assert arms.dtype == jnp.int32
    assert bool(jnp.all(arms == ref_idx))
    assert best == ref_idx

    # Non-multiple-of-2048 arm count, multi-chunk single block, with a tie to
    # exercise first-occurrence semantics.
    big_k = 5000
    big_beta = jax.random.normal(k_big, (big_k,), dtype=jnp.float32)
    big_beta = big_beta.at[700].set(50.0).at[4100].set(50.0)
    got = int(jax.block_until_ready(_argmax_jit(big_beta)))
    assert got == int(jnp.argmax(big_beta)) == 700

    # bf16 path (read natively, promoted in-kernel).
    big_bf16 = big_beta.astype(jnp.bfloat16)
    got_bf = int(jax.block_until_ready(_argmax_jit(big_bf16)))
    assert got_bf == int(jnp.argmax(big_bf16))

    # Force a multi-block grid (small block cap) to exercise the running-max
    # carry across grid steps and cross-block tie-breaking.
    mb_argmax = jax.jit(functools.partial(pallas_argmax,
                                          max_block_bytes=64 * 1024))
    mb_k = 100_000
    mb_beta = jax.random.normal(k_mb, (mb_k,), dtype=jnp.float32)
    mb_beta = mb_beta.at[10_000].set(50.0).at[90_000].set(50.0)
    got_mb = int(jax.block_until_ready(mb_argmax(mb_beta)))
    assert got_mb == int(jnp.argmax(mb_beta)) == 10_000

    print("KERNEL_OK")
</pallas_src>

<mosaic_0001>
module attributes {stable_mosaic.version = 11 : i64} {
  func.func @_argmax_kernel(%arg0: i32, %arg1: memref<1x16x128xf32, #tpu.memory_space<vmem>>, %arg2: memref<1x1xi32, #tpu.memory_space<vmem>>, %arg3: memref<16x128xf32, #tpu.memory_space<vmem>>, %arg4: memref<16x128xi32, #tpu.memory_space<vmem>>) attributes {dimension_semantics = [#tpu.dimension_semantics<arbitrary>], iteration_bounds = array<i64: 1>, scalar_prefetch = 0 : i64, scratch_operands = 2 : i64, tpu.core_type = #tpu.core_type<tc>, window_params = [{transform_indices = @transform_0, window_bounds = array<i64: 1, 16, 128>}, {pipeline_mode = #tpu.pipeline_mode<synchronous>, transform_indices = @transform_1, window_bounds = array<i64: 1, 1>}]} {
    %c0_i32 = arith.constant 0 : i32
    %0 = arith.cmpi eq, %arg0, %c0_i32 : i32
    %1 = arith.extui %0 : i1 to i32
    %c0_i32_0 = arith.constant 0 : i32
    %2 = arith.cmpi ne, %1, %c0_i32_0 : i32
    scf.if %2 {
      %cst_20 = arith.constant 0xFF800000 : f32
      %31 = vector.broadcast %cst_20 : f32 to vector<16x128xf32>
      %c0_21 = arith.constant 0 : index
      %c0_22 = arith.constant 0 : index
      %32 = vector.load %arg3[%c0_21, %c0_22] : memref<16x128xf32, #tpu.memory_space<vmem>>, vector<16x128xf32>
      tpu.vector_store %arg3[%c0_21, %c0_22], %31 {strides = array<i32>} : memref<16x128xf32, #tpu.memory_space<vmem>>, vector<16x128xf32>,
      %c0_i32_23 = arith.constant 0 : i32
      %33 = vector.broadcast %c0_i32_23 : i32 to vector<16x128xi32>
      %c0_24 = arith.constant 0 : index
      %c0_25 = arith.constant 0 : index
      %34 = vector.load %arg4[%c0_24, %c0_25] : memref<16x128xi32, #tpu.memory_space<vmem>>, vector<16x128xi32>
      tpu.vector_store %arg4[%c0_24, %c0_25], %33 {strides = array<i32>} : memref<16x128xi32, #tpu.memory_space<vmem>>, vector<16x128xi32>,
    } else {
    }
    %c0_i32_1 = arith.constant 0 : i32
    %c1_i32 = arith.constant 1 : i32
    %3 = arith.muli %c0_i32_1, %c1_i32 : i32
    %c0_i32_2 = arith.constant 0 : i32
    %4 = arith.addi %c0_i32_2, %3 : i32
    %c1_i32_3 = arith.constant 1 : i32
    %5 = arith.muli %4, %c1_i32_3 : i32
    %6 = tpu.assume_multiple %5, 1 : i32
    %7 = arith.index_cast %6 : i32 to index
    %c0 = arith.constant 0 : index
    %c0_4 = arith.constant 0 : index
    %8 = vector.load %arg1[%7, %c0, %c0_4] : memref<1x16x128xf32, #tpu.memory_space<vmem>>, vector<1x16x128xf32>
    %cst = arith.constant dense<0xFF800000> : vector<16x128xf32>
    %9 = vector.multi_reduction <maximumf>, %8, %cst [0] : vector<1x16x128xf32> to vector<16x128xf32>
    %10 = tpu.iota {dimensions = array<i32: 0>} : vector<1x16x128xi32>
    %11 = vector.shape_cast %9 : vector<16x128xf32> to vector<1x16x128xf32>
    %12 = arith.cmpf oeq, %8, %11 : vector<1x16x128xf32>
    %c2147483647_i32 = arith.constant 2147483647 : i32
    %13 = vector.broadcast %c2147483647_i32 : i32 to vector<1x16x128xi32>
    %14 = arith.select %12, %10, %13 : vector<1x16x128xi1>, vector<1x16x128xi32>
    %cst_5 = arith.constant dense<2147483647> : vector<16x128xi32>
    %15 = vector.multi_reduction <minsi>, %14, %cst_5 [0] : vector<1x16x128xi32> to vector<16x128xi32>
    %c1_i32_6 = arith.constant 1 : i32
    %16 = arith.muli %arg0, %c1_i32_6 : i32
    %17 = arith.addi %16, %6 : i32
    %18 = vector.broadcast %17 : i32 to vector<16x128xi32>
    %19 = arith.addi %15, %18 : vector<16x128xi32>
    %c0_7 = arith.constant 0 : index
    %c0_8 = arith.constant 0 : index
    %20 = vector.load %arg3[%c0_7, %c0_8] : memref<16x128xf32, #tpu.memory_space<vmem>>, vector<16x128xf32>
    %21 = arith.cmpf ogt, %9, %20 : vector<16x128xf32>
    %c0_9 = arith.constant 0 : index
    %c0_10 = arith.constant 0 : index
    %22 = vector.load %arg4[%c0_9, %c0_10] : memref<16x128xi32, #tpu.memory_space<vmem>>, vector<16x128xi32>
    %23 = arith.select %21, %19, %22 : vector<16x128xi1>, vector<16x128xi32>
    %c0_11 = arith.constant 0 : index
    %c0_12 = arith.constant 0 : index
    %24 = vector.load %arg4[%c0_11, %c0_12] : memref<16x128xi32, #tpu.memory_space<vmem>>, vector<16x128xi32>
    tpu.vector_store %arg4[%c0_11, %c0_12], %23 {strides = array<i32>} : memref<16x128xi32, #tpu.memory_space<vmem>>, vector<16x128xi32>,
    %c0_13 = arith.constant 0 : index
    %c0_14 = arith.constant 0 : index
    %25 = vector.load %arg3[%c0_13, %c0_14] : memref<16x128xf32, #tpu.memory_space<vmem>>, vector<16x128xf32>
    %26 = arith.maximumf %25, %9 : vector<16x128xf32>
    %c0_15 = arith.constant 0 : index
    %c0_16 = arith.constant 0 : index
    %27 = vector.load %arg3[%c0_15, %c0_16] : memref<16x128xf32, #tpu.memory_space<vmem>>, vector<16x128xf32>
    tpu.vector_store %arg3[%c0_15, %c0_16], %26 {strides = array<i32>} : memref<16x128xf32, #tpu.memory_space<vmem>>, vector<16x128xf32>,
    %c1_i32_17 = arith.constant 1 : i32
    %c0_i32_18 = arith.constant 0 : i32
    %28 = arith.cmpi eq, %arg0, %c0_i32_18 : i32
    %29 = arith.extui %28 : i1 to i32
    %c0_i32_19 = arith.constant 0 : i32
    %30 = arith.cmpi ne, %29, %c0_i32_19 : i32
    scf.if %30 {
      %c0_20 = arith.constant 0 : index
      %c0_21 = arith.constant 0 : index
      %31 = vector.load %arg3[%c0_20, %c0_21] : memref<16x128xf32, #tpu.memory_space<vmem>>, vector<16x128xf32>
      %32 = tpu.iota {dimensions = array<i32: 0>} : vector<16x128xi32>
      %33 = tpu.iota {dimensions = array<i32: 1>} : vector<16x128xi32>
      %c0_22 = arith.constant 0 : index
      %c0_23 = arith.constant 0 : index
      %34 = vector.load %arg4[%c0_22, %c0_23] : memref<16x128xi32, #tpu.memory_space<vmem>>, vector<16x128xi32>
      %c16_i32 = arith.constant 16 : i32
      %35 = vector.broadcast %c16_i32 : i32 to vector<16x128xi32>
      %36 = arith.muli %34, %35 : vector<16x128xi32>
      %37 = arith.addi %36, %32 : vector<16x128xi32>
      %c128_i32 = arith.constant 128 : i32
      %38 = vector.broadcast %c128_i32 : i32 to vector<16x128xi32>
      %39 = arith.muli %37, %38 : vector<16x128xi32>
      %40 = arith.addi %39, %33 : vector<16x128xi32>
      %cst_24 = arith.constant dense<0xFF800000> : vector<16xf32>
      %41 = vector.multi_reduction <maximumf>, %31, %cst_24 [1] : vector<16x128xf32> to vector<16xf32>
      %42 = vector.shape_cast %41 : vector<16xf32> to vector<16x1xf32>
      %cst_25 = arith.constant dense<0xFF800000> : vector<1xf32>
      %43 = vector.multi_reduction <maximumf>, %42, %cst_25 [0] : vector<16x1xf32> to vector<1xf32>
      %44 = vector.shape_cast %43 : vector<1xf32> to vector<1x1xf32>
      %45 = vector.broadcast %44 : vector<1x1xf32> to vector<16x128xf32>
      %46 = arith.cmpf oeq, %31, %45 : vector<16x128xf32>
      %c2147483647_i32_26 = arith.constant 2147483647 : i32
      %47 = vector.broadcast %c2147483647_i32_26 : i32 to vector<16x128xi32>
      %48 = arith.select %46, %40, %47 : vector<16x128xi1>, vector<16x128xi32>
      %cst_27 = arith.constant dense<2147483647> : vector<16xi32>
      %49 = vector.multi_reduction <minsi>, %48, %cst_27 [1] : vector<16x128xi32> to vector<16xi32>
      %50 = vector.shape_cast %49 : vector<16xi32> to vector<16x1xi32>
      %cst_28 = arith.constant dense<2147483647> : vector<1xi32>
      %51 = vector.multi_reduction <minsi>, %50, %cst_28 [0] : vector<16x1xi32> to vector<1xi32>
      %52 = vector.shape_cast %51 : vector<1xi32> to vector<1x1xi32>
      %c0_29 = arith.constant 0 : index
      %c0_30 = arith.constant 0 : index
      %53 = vector.load %arg2[%c0_29, %c0_30] : memref<1x1xi32, #tpu.memory_space<vmem>>, vector<1x1xi32>
      tpu.vector_store %arg2[%c0_29, %c0_30], %52 {strides = array<i32>} : memref<1x1xi32, #tpu.memory_space<vmem>>, vector<1x1xi32>,
    } else {
    }
    return
  }
  func.func @transform_0(%arg0: i32) -> (i32, i32, i32) {
    %c0_i32 = arith.constant 0 : i32
    %c0_i32_0 = arith.constant 0 : i32
    %c0_i32_1 = arith.constant 0 : i32
    return %arg0, %c0_i32, %c0_i32_0 : i32, i32, i32
  }
  func.func @transform_1(%arg0: i32) -> (i32, i32) {
    %c0_i32 = arith.constant 0 : i32
    %c0_i32_0 = arith.constant 0 : i32
    %c0_i32_1 = arith.constant 0 : i32
    return %c0_i32, %c0_i32_0 : i32, i32
  }
}

</mosaic_0001>

<bundles_post_ra>
// kernel: _exploit_impl.2
= control target key start
LH: loop header
LB: loop body
LE: loop exit
PB: predicated region body
PF: predicated region fallthrough
CT: control target
= control target key end

     0   :  { %s248_s0 = inlined_call_operand.hbm [shape: f32[8], index: 0, kind: input, shape index: {}]   ;;  %s249_s1 = inlined_call_operand.<no memory space> [shape: f32[], index: 1, kind: input, shape index: {}]   ;;  %s250_s2 = inlined_call_operand.hbm [shape: s32[1,1], index: 2, kind: output, shape index: {}]  }
   0x1   :  { %v7_v0 = vstv %s249_s1 }
   0x2   :  { %8 = vsyncpa [#allocation10], 0 }
   0x3   :  { %9 = vsyncpa [#allocation11], 0  ;;  %s15_s13 = sshll.u32 %s248_s0, 4  ;;  %s221_s14 = smov [#allocation9]   ;;  %s16_s13 = int_to_ptr.hbm [resolvable:$true] %s15_s13 }
   0x4   :  { %s17_s15 = sshll.u32 %s221_s14, 4  ;;  %s18_s15 = int_to_ptr.vmem [resolvable:$true] %s17_s15 }
   0x5   :  { %20 = dma.hbm_to_vmem [thread:$0]  %s16_s13, 16, %s18_s15, [#allocation10]  }
   0x6   :  { %217 = dma.done.wait [#allocation10], 16  }
   0x7   :  { %218 = vsyncadd [#allocation10], 4294967280  ;;  %v26_v1 = vlaneseq  ;;  %v25_v2 = vld [vmem:[#allocation9] sm:$0x1]  ;;  %v222_v5 = vmov 2147483647   ;;  %vm50_vm3 = vcmp.eq.f32.partialorder %v7_v0, %v7_v0 }
   0x8   :  { %v52_v8 = vsel %vm50_vm3, 0, %v222_v5  ;;  %vm60_vm4 = vcmp.gt.f32.partialorder %v7_v0, -inf  ;;  %s223_s0 = smov [#allocation12]   ;;  %s156_s18 = sshll.u32 %s250_s2, 4  ;;  %vm147_vm12 = vcmask 0   ;;  %s157_s18 = int_to_ptr.hbm [resolvable:$true] %s156_s18 }
   0x9   :  { %vm28_vm0 = vcmp.lt.s32.totalorder %v26_v1, 8  ;;  %v79_v11 = vshrl.u32 %v26_v1, 7  ;;  %v64_v13 = vsel %vm60_vm4, %v52_v8, 0  ;;  %v82_v20 = vand.u32 127, %v26_v1  ;;  %s154_s1 = sshll.u32 %s223_s0, 4  ;;  %s155_s1 = int_to_ptr.vmem [resolvable:$true] %s154_s1 }
   0xa   :  { %v29_v3 = vsel %vm28_vm0, %v25_v2, %v7_v0  ;;  %v86_v17 = vmul.u32 16, %v64_v13 }
   0xb   :  { %93 = vmax.xlane.f32.xlu0 %v29_v3  ;;  %vm49_vm1 = vcmp.eq.f32.partialorder %v29_v3, %v29_v3  ;;  %vm59_vm2 = vcmp.gt.f32.partialorder %v29_v3, -inf  ;;  %v80_v16 = vadd.s32 8, %v79_v11 }
   0xc   :  { %v51_v6 = vsel %vm49_vm1, 0, %v222_v5 }
   0xd   :  { %v63_v7 = vsel %vm59_vm2, %v51_v6, 0  ;;  %v88_v22 = vadd.s32 %v86_v17, %v80_v16 }
   0xe   :  { %v85_v9 = vmul.u32 16, %v63_v7 }
   0xf   :  { %v90_v26 = vmul.u32 128, %v88_v22 }
  0x10   :  { %v87_v15 = vadd.s32 %v85_v9, %v79_v11 }
  0x11   :  { %v92_v29 = vadd.s32 %v90_v26, %v82_v20 }
  0x12   :  { %v89_v21 = vmul.u32 128, %v87_v15 }
  0x13   :  { %95 = vmax.xlane.f32.xlu0 %v7_v0 }
  0x14   :  { %v91_v25 = vadd.s32 %v89_v21, %v82_v20 }
  0x7e   :  { %v94_v4 = vpop.xlane.xlu0 %93 }
  0x86   :  { %v96_v10 = vpop.xlane.xlu0 %95 }
  0x87   :  { %v97_v12 = vmax.f32 %v94_v4, %v96_v10 }
  0x89   :  { %v98_v14 = vrot.slane %v97_v12, 4 }
  0x8b   :  { %v99_v18 = vmax.f32 %v97_v12, %v98_v14 }
  0x8d   :  { %v100_v19 = vrot.slane %v99_v18, 2 }
  0x8f   :  { %v101_v23 = vmax.f32 %v99_v18, %v100_v19 }
  0x91   :  { %v102_v24 = vrot.slane %v101_v23, 1 }
  0x93   :  { %v103_v27 = vmax.f32 %v101_v23, %v102_v24 }
  0x95   :  { %vm104_vm5 = vcmp.eq.f32.partialorder %v29_v3, %v103_v27  ;;  %vm105_vm6 = vcmp.eq.f32.partialorder %v7_v0, %v103_v27 }
  0x96   :  { %v106_v28 = vsel %vm104_vm5, %v91_v25, 2147483647  ;;  %v107_v32 = vsel %vm105_vm6, %v92_v29, 2147483647 }
  0x97   :  { %v109_v30 = vshra.s32 %v106_v28, 16  ;;  %v123_v33 = vshra.s32 %v107_v32, 16  ;;  %v108_v35 = vand.u32 65535, %v106_v28  ;;  %v122_v39 = vand.u32 65535, %v107_v32 }
  0x99   :  { %v111_v31 = vcvt.s32.f32 %v109_v30  ;;  %v125_v34 = vcvt.s32.f32 %v123_v33  ;;  %v110_v37 = vcvt.s32.f32 %v108_v35  ;;  %v124_v41 = vcvt.s32.f32 %v122_v39 }
  0x9b   :  { %112 = vmin.xlane.f32.xlu1 %v111_v31 }
  0xa3   :  { %126 = vmin.xlane.f32.xlu1 %v125_v34 }
 0x10e   :  { %v113_v36 = vpop.xlane.xlu1 %112 }
 0x10f   :  { %vm114_vm7 = vcmp.eq.f32.partialorder %v111_v31, %v113_v36  ;;  %v119_v44 = vcvt.f32.s32 %v113_v36 }
 0x110   :  { %v115_v38 = vsel %vm114_vm7, %v110_v37, inf }
 0x111   :  { %116 = vmin.xlane.f32.xlu2 %v115_v38  ;;  %v120_v48 = vshll.u32 %v119_v44, 16 }
 0x116   :  { %v127_v40 = vpop.xlane.xlu1 %126 }
 0x117   :  { %vm128_vm8 = vcmp.eq.f32.partialorder %v125_v34, %v127_v40  ;;  %v133_v45 = vcvt.f32.s32 %v127_v40 }
 0x118   :  { %v129_v42 = vsel %vm128_vm8, %v124_v41, inf }
 0x119   :  { %130 = vmin.xlane.f32.xlu2 %v129_v42  ;;  %v134_v49 = vshll.u32 %v133_v45, 16 }
 0x184   :  { %v117_v43 = vpop.xlane.xlu2 %116 }
 0x185   :  { %v118_v46 = vcvt.f32.s32 %v117_v43 }
 0x187   :  { %v121_v51 = vadd.s32 %v120_v48, %v118_v46 }
 0x18c   :  { %v131_v47 = vpop.xlane.xlu2 %130 }
 0x18d   :  { %v132_v50 = vcvt.f32.s32 %v131_v47 }
 0x18f   :  { %v135_v52 = vadd.s32 %v134_v49, %v132_v50 }
 0x191   :  { %vm136_vm9 = vcmp.lt.s32.totalorder %v121_v51, %v135_v52 }
 0x192   :  { %v137_v53 = vsel %vm136_vm9, %v121_v51, %v135_v52 }
 0x193   :  { %v138_v54 = vrot.slane %v137_v53, 4 }
 0x195   :  { %vm139_vm10 = vcmp.lt.s32.totalorder %v137_v53, %v138_v54 }
 0x196   :  { %v140_v55 = vsel %vm139_vm10, %v137_v53, %v138_v54 }
 0x197   :  { %v141_v56 = vrot.slane %v140_v55, 2 }
 0x199   :  { %vm142_vm11 = vcmp.lt.s32.totalorder %v140_v55, %v141_v56 }
 0x19a   :  { %v143_v57 = vsel %vm142_vm11, %v140_v55, %v141_v56 }
 0x19b   :  { %v144_v58 = vrot.slane %v143_v57, 1 }
 0x19d   :  { %vm145_vm13 = vcmp.lt.s32.totalorder %v143_v57, %v144_v58 }
 0x19e   :  { %v146_v59 = vsel %vm145_vm13, %v143_v57, %v144_v58 }
 0x19f   :  { %148 = vst.msk [vmem:[#allocation12] sm:$0x1] %vm147_vm12, %v146_v59 }
 0x1a0   :  { %159 = dma.vmem_to_hbm [thread:$0]  %s155_s1, 16, %s157_s18, [#allocation11]  }
 0x1a1   :  { %219 = dma.done.wait [#allocation11], 16  }
 0x1a2   :  { %220 = vsyncadd [#allocation11], 4294967280 }
 0x1a3   :  { %164 = vsyncpa [#allocation10], 1 }
 0x1a4   :  { %165 = vsyncpa [#allocation11], 1 }

</bundles_post_ra>
